<compile_context>
chip_gen: v7x
topology: tpu7x:2x2x1
jax: 0.10.0
libtpu: 0.0.40
codegen_flags: <defaults>
</compile_context>

<pallas_src>
import functools

import jax
import jax.numpy as jnp
from jax.experimental import pallas as pl
from jax.experimental.pallas import tpu as pltpu


def _critic_kernel(x_ref, w1_ref, b1_ref, w2_ref, b2_ref, o_ref):
    # x_ref : (obs, bb)      -- batch on lanes
    # w1_ref: (hidden, obs)  -- PyTorch layout, resident across the grid
    # b1_ref: (hidden, 1)
    # w2_ref: (hidden, 1)
    # b2_ref: (1, 1) scalar in SMEM
    # o_ref : (1, 1, bb)     -- lane-dense output row
    h = jnp.dot(
        w1_ref[...], x_ref[...],
        preferred_element_type=jnp.float32,
        precision=jax.lax.Precision.HIGHEST,
    )                                              # (hidden, bb)
    h = h + b1_ref[...]                            # (hidden, 1) broadcast over lanes
    h = jnp.maximum(h, 0.01 * h)                   # LeakyReLU, slope 0.01

    # 128 -> 1 projection: VPU multiply + cross-sublane (XLU) reduce.
    # Result is already lane-major, so the store is a wide unmasked vst.
    v = jnp.sum(h * w2_ref[...], axis=0, keepdims=True)   # (1, bb)
    o_ref[0] = (v + b2_ref[0, 0]).astype(o_ref.dtype)


@functools.partial(jax.jit, static_argnames=("block_b",))
def critic_forward(x, w1, b1, w2, b2, *, block_b=1024):
    """Critic forward pass.

    x : (B, obs) float32
    w1: (hidden, obs), b1: (hidden, 1), w2: (hidden, 1), b2: (1, 1)
    Returns (B, 1).
    block_b should be a multiple of 128 (it is clamped to B for small batches).
    """
    B, obs = x.shape
    hidden = w1.shape[0]

    bb = min(block_b, B)            # bb == B (full dim) or a multiple of 128
    grid = pl.cdiv(B, bb)

    # Layout plumbing only: batch onto the lane axis.
    x_t = x.T                       # (obs, B)

    out = pl.pallas_call(
        _critic_kernel,
        out_shape=jax.ShapeDtypeStruct((grid, 1, bb), x.dtype),
        grid_spec=pltpu.PrefetchScalarGridSpec(
            num_scalar_prefetch=0,
            grid=(grid,),
            in_specs=[
                pl.BlockSpec((obs, bb), lambda i: (0, i)),        # x tile (lanes = batch)
                pl.BlockSpec((hidden, obs), lambda i: (0, 0)),    # W1 (resident)
                pl.BlockSpec((hidden, 1), lambda i: (0, 0)),      # b1
                pl.BlockSpec((hidden, 1), lambda i: (0, 0)),      # W2 column
                pl.BlockSpec(memory_space=pltpu.MemorySpace.SMEM),  # b2 scalar
            ],
            out_specs=pl.BlockSpec((1, 1, bb), lambda i: (i, 0, 0)),
        ),
        compiler_params=pltpu.CompilerParams(
            dimension_semantics=("parallel",),   # shards grid over v7x megacore
        ),
    )(x_t, w1, b1, w2, b2)

    # Lane-dense (grid, 1, bb) slab -> (B, 1); padded tail rows dropped.
    return out.reshape(grid * bb)[:B].reshape(B, 1)


def init_critic_params(key, observation_size, hidden=128, dtype=jnp.float32):
    """Deterministic synthetic init matching the PyTorch module's shapes.

    nn.Linear weight is (out, in); we keep W1 in that layout and store W2 as
    a (hidden, 1) column (the transpose of its (1, hidden) PyTorch weight).
    """
    k1, k2, k3, k4 = jax.random.split(key, 4)
    lim1 = 1.0 / jnp.sqrt(observation_size)
    lim2 = 1.0 / jnp.sqrt(hidden)
    w1 = jax.random.uniform(k1, (hidden, observation_size), dtype, -lim1, lim1)
    b1 = jax.random.uniform(k2, (hidden, 1), dtype, -lim1, lim1)
    w2 = jax.random.uniform(k3, (hidden, 1), dtype, -lim2, lim2)
    b2 = jax.random.uniform(k4, (1, 1), dtype, -lim2, lim2)
    return w1, b1, w2, b2


def critic_ref(x, w1, b1, w2, b2):
    """Pure-JAX reference for correctness checking."""
    h = jnp.dot(x, w1.T, precision=jax.lax.Precision.HIGHEST) + b1.reshape(1, -1)
    h = jnp.maximum(h, 0.01 * h)
    return jnp.dot(h, w2, precision=jax.lax.Precision.HIGHEST) + b2


if __name__ == "__main__":
    observation_size = 32
    batch = 256

    key = jax.random.PRNGKey(0)
    kx, kp = jax.random.split(key)
    x = jax.random.normal(kx, (batch, observation_size), dtype=jnp.float32)
    w1, b1, w2, b2 = init_critic_params(kp, observation_size)

    out = jax.block_until_ready(critic_forward(x, w1, b1, w2, b2))
    ref = critic_ref(x, w1, b1, w2, b2)

    assert out.shape == (batch, 1), out.shape
    max_err = jnp.max(jnp.abs(out - ref))
    assert jnp.allclose(out, ref, atol=1e-4, rtol=1e-4), f"mismatch: max abs err {max_err}"
    print("KERNEL_OK")
</pallas_src>

<mosaic_0001>
module attributes {stable_mosaic.version = 11 : i64} {
  func.func @_critic_kernel(%arg0: i32, %arg1: memref<32x256xf32, #tpu.memory_space<vmem>>, %arg2: memref<128x32xf32, #tpu.memory_space<vmem>>, %arg3: memref<128x1xf32, #tpu.memory_space<vmem>>, %arg4: memref<128x1xf32, #tpu.memory_space<vmem>>, %arg5: memref<1x1xf32, #tpu.memory_space<smem>>, %arg6: memref<1x1x256xf32, #tpu.memory_space<vmem>>) attributes {dimension_semantics = [#tpu.dimension_semantics<parallel>], iteration_bounds = array<i64: 1>, scalar_prefetch = 0 : i64, scratch_operands = 0 : i64, tpu.core_type = #tpu.core_type<tc>, window_params = [{transform_indices = @transform_0, window_bounds = array<i64: 32, 256>}, {pipeline_mode = #tpu.pipeline_mode<synchronous>, transform_indices = @transform_1, window_bounds = array<i64: 128, 32>}, {pipeline_mode = #tpu.pipeline_mode<synchronous>, transform_indices = @transform_2, window_bounds = array<i64: 128, 1>}, {pipeline_mode = #tpu.pipeline_mode<synchronous>, transform_indices = @transform_3, window_bounds = array<i64: 128, 1>}, {transform_indices = @transform_4, window_bounds = array<i64: 1, 1>}, {transform_indices = @transform_5, window_bounds = array<i64: 1, 1, 256>}]} {
    %c0 = arith.constant 0 : index
    %c0_0 = arith.constant 0 : index
    %0 = vector.load %arg2[%c0, %c0_0] : memref<128x32xf32, #tpu.memory_space<vmem>>, vector<128x32xf32>
    %c0_1 = arith.constant 0 : index
    %c0_2 = arith.constant 0 : index
    %1 = vector.load %arg1[%c0_1, %c0_2] : memref<32x256xf32, #tpu.memory_space<vmem>>, vector<32x256xf32>
    %cst = arith.constant dense<0.000000e+00> : vector<128x256xf32>
    %2 = tpu.matmul %0, %1, %cst {dimension_numbers = #tpu.dot_dimension_numbers<[1], [0], [0], [1], [0, 0, 1, 1], [], []>, precision = #tpu.contract_precision<fp32>} : vector<128x32xf32>, vector<32x256xf32>, vector<128x256xf32> -> vector<128x256xf32>
    %c0_3 = arith.constant 0 : index
    %c0_4 = arith.constant 0 : index
    %3 = vector.load %arg3[%c0_3, %c0_4] : memref<128x1xf32, #tpu.memory_space<vmem>>, vector<128x1xf32>
    %4 = vector.broadcast %3 : vector<128x1xf32> to vector<128x256xf32>
    %5 = arith.addf %2, %4 : vector<128x256xf32>
    %cst_5 = arith.constant 0.00999999977 : f32
    %6 = vector.broadcast %cst_5 : f32 to vector<128x256xf32>
    %7 = arith.mulf %6, %5 : vector<128x256xf32>
    %8 = arith.maximumf %5, %7 : vector<128x256xf32>
    %c0_6 = arith.constant 0 : index
    %c0_7 = arith.constant 0 : index
    %9 = vector.load %arg4[%c0_6, %c0_7] : memref<128x1xf32, #tpu.memory_space<vmem>>, vector<128x1xf32>
    %10 = vector.broadcast %9 : vector<128x1xf32> to vector<128x256xf32>
    %11 = arith.mulf %8, %10 : vector<128x256xf32>
    %cst_8 = arith.constant dense<0.000000e+00> : vector<256xf32>
    %12 = vector.multi_reduction <add>, %11, %cst_8 [0] : vector<128x256xf32> to vector<256xf32>
    %13 = vector.shape_cast %12 : vector<256xf32> to vector<1x256xf32>
    %c0_9 = arith.constant 0 : index
    %c0_10 = arith.constant 0 : index
    %14 = memref.load %arg5[%c0_9, %c0_10] : memref<1x1xf32, #tpu.memory_space<smem>>
    %15 = vector.broadcast %14 : f32 to vector<1x256xf32>
    %16 = arith.addf %13, %15 : vector<1x256xf32>
    %c0_11 = arith.constant 0 : index
    %c0_12 = arith.constant 0 : index
    %c0_13 = arith.constant 0 : index
    %17 = vector.load %arg6[%c0_11, %c0_12, %c0_13] : memref<1x1x256xf32, #tpu.memory_space<vmem>>, vector<1x1x256xf32>
    %18 = vector.shape_cast %17 : vector<1x1x256xf32> to vector<1x256xf32>
    %19 = vector.shape_cast %16 : vector<1x256xf32> to vector<1x1x256xf32>
    tpu.vector_store %arg6[%c0_11, %c0_12, %c0_13], %19 {strides = array<i32>} : memref<1x1x256xf32, #tpu.memory_space<vmem>>, vector<1x1x256xf32>,
    return
  }
  func.func @transform_0(%arg0: i32) -> (i32, i32) {
    %c0_i32 = arith.constant 0 : i32
    %c0_i32_0 = arith.constant 0 : i32
    return %c0_i32, %arg0 : i32, i32
  }
  func.func @transform_1(%arg0: i32) -> (i32, i32) {
    %c0_i32 = arith.constant 0 : i32
    %c0_i32_0 = arith.constant 0 : i32
    %c0_i32_1 = arith.constant 0 : i32
    return %c0_i32, %c0_i32_0 : i32, i32
  }
  func.func @transform_2(%arg0: i32) -> (i32, i32) {
    %c0_i32 = arith.constant 0 : i32
    %c0_i32_0 = arith.constant 0 : i32
    %c0_i32_1 = arith.constant 0 : i32
    return %c0_i32, %c0_i32_0 : i32, i32
  }
  func.func @transform_3(%arg0: i32) -> (i32, i32) {
    %c0_i32 = arith.constant 0 : i32
    %c0_i32_0 = arith.constant 0 : i32
    %c0_i32_1 = arith.constant 0 : i32
    return %c0_i32, %c0_i32_0 : i32, i32
  }
  func.func @transform_4(%arg0: i32) -> (i32, i32) {
    %c0_i32 = arith.constant 0 : i32
    %c0_i32_0 = arith.constant 0 : i32
    %c0_i32_1 = arith.constant 0 : i32
    return %c0_i32, %c0_i32_0 : i32, i32
  }
  func.func @transform_5(%arg0: i32) -> (i32, i32, i32) {
    %c0_i32 = arith.constant 0 : i32
    %c0_i32_0 = arith.constant 0 : i32
    %c0_i32_1 = arith.constant 0 : i32
    return %arg0, %c0_i32, %c0_i32_0 : i32, i32, i32
  }
}

</mosaic_0001>

<bundles_post_ra>
// kernel: critic_forward.1
= control target key start
LH: loop header
LB: loop body
LE: loop exit
PB: predicated region body
PF: predicated region fallthrough
CT: control target
= control target key end

     0   :  { %vm142_vm0 = vcmask 261120   ;;  %v2014_v9 = vmov 0.0   ;;  %s2670_s0 = inlined_call_operand.vmem [shape: f32[32,256], index: 0, kind: input, shape index: {}]   ;;  %s2671_s1 = inlined_call_operand.vmem [shape: f32[128,32], index: 1, kind: input, shape index: {}]   ;;  %s2672_s2 = inlined_call_operand.vmem [shape: f32[128,1], index: 2, kind: input, shape index: {}]   ;;  %s2673_s3 = inlined_call_operand.vmem [shape: f32[128,1], index: 3, kind: input, shape index: {}]   ;;  %s2674_s4 = inlined_call_operand.<no memory space> [shape: f32[1,1], index: 4, kind: input, shape index: {}]   ;;  %s2675_s5 = inlined_call_operand.hbm [shape: f32[1,1,256], index: 5, kind: output, shape index: {}]  }
   0x1   :  { %v39_v0 = vld [vmem:[%s2670_s0 + $0x8] sm:$0xff]  ;;  %v41_v1 = vld [vmem:[%s2670_s0 + $0x18] sm:$0xff]  ;;  %v38_v2 = vld [vmem:[%s2670_s0] sm:$0xff]  ;;  %263 = vmatprep.mubr.f32.mxu1 %v2014_v9  ;;  %938 = vmatprep.mubr.f32.mxu0 %v2014_v9 }
   0x2   :  { %v191_v3 = vand.u32 4294901760, %v39_v0  ;;  %v195_v4 = vand.u32 4294901760, %v41_v1  ;;  %v40_v5 = vld [vmem:[%s2670_s0 + $0x10] sm:$0xff]  ;;  %v193_v6 = vand.u32 4294901760, %v38_v2  ;;  %v2063_v7 = vld [vmem:[%s2670_s0 + $0x28] sm:$0xff]  ;;  %v2068_v8 = vld [vmem:[%s2670_s0 + $0x38] sm:$0xff] }
   0x3   :  { %v197_v10 = vand.u32 4294901760, %v40_v5  ;;  %v199_v11 = vand.u32 4294901760, %v2063_v7  ;;  %v203_v12 = vand.u32 4294901760, %v2068_v8  ;;  %v2077_v13 = vld [vmem:[%s2670_s0 + $0x20] sm:$0xff]  ;;  %v2082_v14 = vld [vmem:[%s2670_s0 + $0x30] sm:$0xff]  ;;  %v23_v30 = vld [vmem:[%s2671_s1 + $0x8] sm:$0xff] }
   0x4   :  { %v22_v15 = vld [vmem:[%s2671_s1] sm:$0xff]  ;;  %v2087_v16 = vpack.c.bf16 %v195_v4, %v191_v3  ;;  %v2089_v17 = vsub.f32 %v39_v0, %v191_v3  ;;  %v2091_v18 = vsub.f32 %v41_v1, %v195_v4  ;;  %v2093_v19 = vsub.f32 %v38_v2, %v193_v6  ;;  %v24_v37 = vld [vmem:[%s2671_s1 + $0x10] sm:$0xff]  ;;  %v25_v38 = vld [vmem:[%s2671_s1 + $0x18] sm:$0xff] }
   0x5   :  { %v2095_v20 = vpack.c.bf16 %v197_v10, %v193_v6  ;;  %v2097_v21 = vsub.f32 %v40_v5, %v197_v10  ;;  %v2103_v22 = vpack.c.bf16 %v203_v12, %v199_v11  ;;  %v201_v23 = vand.u32 4294901760, %v2077_v13 }
   0x6   :  { %1745 = vmatprep.subr.bf16.mxu1 %v2087_v16  ;;  %1769 = vmatprep.subr.bf16.mxu0 %v2087_v16  ;;  %v205_v24 = vand.u32 4294901760, %v2082_v14  ;;  %v144_v25 = vsel %vm142_vm0, %v22_v15, 0  ;;  %v442_v27 = vand.u32 4294901760, %v2089_v17  ;;  %v454_v28 = vand.u32 4294901760, %v2091_v18 }
   0x7   :  { %1747 = vmatpush1.bf16.msra.mxu1 %v2095_v20  ;;  %1771 = vmatpush1.bf16.msra.mxu0 %v2095_v20  ;;  %v2112_v26 = vand.u32 4294901760, %v144_v25  ;;  %v448_v29 = vand.u32 4294901760, %v2093_v19  ;;  %v460_v32 = vand.u32 4294901760, %v2097_v21 }
   0x8   :  { %1749 = vmatprep.subr.bf16.mxu1 %v2103_v22  ;;  %1773 = vmatprep.subr.bf16.mxu0 %v2103_v22  ;;  %v2126_v31 = vpack.c.bf16 %v205_v24, %v201_v23  ;;  %v443_v34 = vsub.f32 %v2089_v17, %v442_v27  ;;  %v455_v35 = vsub.f32 %v2091_v18, %v454_v28 }
   0x9   :  { %v2130_v33 = vsub.f32 %v144_v25, %v2112_v26  ;;  %v449_v36 = vsub.f32 %v2093_v19, %v448_v29 }
   0xa   :  { %11 = vsyncpa [#allocation4], 0  ;;  %v461_v39 = vsub.f32 %v2097_v21, %v460_v32  ;;  %v1776_v40 = vpack.c.bf16 %v454_v28, %v442_v27  ;;  %v1778_v41 = vpack.c.bf16 %v460_v32, %v448_v29  ;;  %v147_v42 = vsel %vm142_vm0, %v23_v30, 0  ;;  %v26_v47 = vld [vmem:[%s2671_s1 + $0x20] sm:$0xff]  ;;  %v27_v48 = vld [vmem:[%s2671_s1 + $0x28] sm:$0xff]  ;;  %s2017_s23 = smov [#allocation3]  }
   0xb   :  { %1751 = vmatpush1.bf16.msra.mxu1 %v2126_v31  ;;  %1775 = vmatpush1.bf16.msra.mxu0 %v2126_v31  ;;  %v266_v43 = vand.u32 4294901760, %v2130_v33  ;;  %v444_v44 = vand.u32 4294901760, %v443_v34  ;;  %v456_v45 = vand.u32 4294901760, %v455_v35  ;;  %v450_v46 = vand.u32 4294901760, %v449_v36  ;;  %v28_v61 = vld [vmem:[%s2671_s1 + $0x30] sm:$0xff]  ;;  %v29_v27 = vld [vmem:[%s2671_s1 + $0x38] sm:$0xff] }
   0xc   :  { %v462_v49 = vand.u32 4294901760, %v461_v39  ;;  %1777 = vmatprep.subr.bf16.mxu0 %v1776_v40  ;;  %v2152_v50 = vand.u32 4294901760, %v147_v42  ;;  %v150_v51 = vsel %vm142_vm0, %v24_v37, 0  ;;  %v153_v52 = vsel %vm142_vm0, %v25_v38, 0  ;;  %s1736_s24 = sshll.u32 %s2017_s23, 4  ;;  %s1737_s24 = int_to_ptr.vmem [resolvable:$true] %s1736_s24 }
   0xd   :  { %v267_v53 = vsub.f32 %v2130_v33, %v266_v43  ;;  %v1752_v54 = vpack.c.bf16 %v456_v45, %v444_v44  ;;  %v2157_v55 = vand.u32 4294901760, %v150_v51  ;;  %v2159_v56 = vand.u32 4294901760, %v153_v52  ;;  %s1990_s25 = scalar_lea.vmem %s1737_s24, 32  ;;  %p1995_p1 = scmp.lt.s32.totalorder %s1737_s24, %s1737_s24 }
   0xe   :  { %942 = vmatmul.mubr.f32.vlgmr.msra.gmra.mrb[0].mxu0 %v266_v43  ;;  %v1754_v57 = vpack.c.bf16 %v462_v49, %v450_v46  ;;  %v2162_v58 = vsub.f32 %v147_v42, %v2152_v50  ;;  %v156_v59 = vsel %vm142_vm0, %v26_v47, 0  ;;  %v159_v60 = vsel %vm142_vm0, %v27_v48, 0  ;;  %p1991_p0 = scmp.ne.s32.totalorder %s1737_s24, %s1990_s25  ;;  %p1996_p2 = scmp.lt.s32.totalorder %s1990_s25, %s1990_s25 }
   0xf   :  { %v268_v62 = vand.u32 4294901760, %v267_v53  ;;  %1753 = vmatprep.subr.bf16.mxu1 %v1752_v54  ;;  %947 = vmatprep.mubr.f32.mxu0 %v2014_v9  ;;  %v2171_v63 = vsub.f32 %v150_v51, %v2157_v55  ;;  %v2174_v0 = vsub.f32 %v153_v52, %v2159_v56  ;;  %v2176_v1 = vand.u32 4294901760, %v156_v59  ;;  %v31_v54 = vld [vmem:[%s2671_s1 + $0x48] sm:$0xff] }
  0x10   :  { %1779 = vmatpush1.bf16.msra.mxu0 %v1778_v41  ;;  %v277_v2 = vand.u32 4294901760, %v2162_v58  ;;  %v2180_v4 = vand.u32 4294901760, %v159_v60  ;;  %v162_v5 = vsel %vm142_vm0, %v28_v61, 0  ;;  %v2186_v6 = vsub.f32 %v2063_v7, %v199_v11  ;;  %p1997_p3 = por %p1996_p2, %p1995_p1 }
  0x11   :  { %269 = vmatmul.mubr.f32.vlgmr.msra.gmra.mrb[0].mxu1 %v268_v62  ;;  %v288_v3 = vand.u32 4294901760, %v2171_v63  ;;  %v299_v15 = vand.u32 4294901760, %v2174_v0  ;;  %v2192_v25 = vsub.f32 %v156_v59, %v2176_v1  ;;  %v2200_v28 = vsub.f32 %v2068_v8, %v203_v12 }
  0x12   :  { %1755 = vmatpush1.bf16.msra.mxu1 %v1754_v57  ;;  %274 = vmatprep.mubr.f32.mxu1 %v2014_v9  ;;  %v278_v10 = vsub.f32 %v2162_v58, %v277_v2  ;;  %v2205_v7 = vsub.f32 %v2077_v13, %v201_v23  ;;  %v2209_v30 = vand.u32 4294901760, %v162_v5  ;;  %v2214_v32 = vsub.f32 %v2082_v14, %v205_v24  ;;  %v30_v13 = vld [vmem:[%s2671_s1 + $0x40] sm:$0xff]  ;;  %p1998_p4 = pnand %p1997_p3, %p1991_p0 }
  0x13   :  { %951 = vmatmul.mubr.f32.gmra.mrb[2].mxu0 %v277_v2  ;;  %v289_v11 = vsub.f32 %v2171_v63, %v288_v3  ;;  %v2217_v8 = vsub.f32 %v159_v60, %v2180_v4  ;;  %v165_v12 = vsel %vm142_vm0, %v29_v27, 0  ;;  %v300_v34 = vsub.f32 %v2174_v0, %v299_v15 }
  0x14   :  { %v279_v29 = vand.u32 4294901760, %v278_v10  ;;  %956 = vmatprep.mubr.f32.mxu0 %v2014_v9  ;;  %v310_v35 = vand.u32 4294901760, %v2192_v25  ;;  %v466_v36 = vand.u32 4294901760, %v2186_v6  ;;  %v478_v14 = vand.u32 4294901760, %v2200_v28 }
  0x15   :  { %v290_v23 = vand.u32 4294901760, %v289_v11  ;;  %v472_v24 = vand.u32 4294901760, %v2205_v7  ;;  %v2231_v37 = vsub.f32 %v162_v5, %v2209_v30  ;;  %v2233_v38 = vand.u32 4294901760, %v165_v12 }
  0x16   :  { %280 = vmatmul.mubr.f32.gmra.mrb[2].mxu1 %v279_v29  ;;  %v168_v39 = vsel %vm142_vm0, %v30_v13, 0  ;;  %v467_v40 = vsub.f32 %v2186_v6, %v466_v36  ;;  %v321_v41 = vand.u32 4294901760, %v2217_v8  ;;  %v479_v42 = vsub.f32 %v2200_v28, %v478_v14 }
  0x17   :  { %285 = vmatprep.mubr.f32.mxu1 %v2014_v9  ;;  %960 = vmatmul.mubr.f32.gmra.mrb[4].mxu0 %v288_v3  ;;  %v473_v43 = vsub.f32 %v2205_v7, %v472_v24  ;;  %v484_v44 = vand.u32 4294901760, %v2214_v32  ;;  %v301_v45 = vand.u32 4294901760, %v300_v34  ;;  %v311_v46 = vsub.f32 %v2192_v25, %v310_v35  ;;  %v33_v34 = vld [vmem:[%s2671_s1 + $0x58] sm:$0xff] }
  0x18   :  { %965 = vmatprep.mubr.f32.mxu0 %v2014_v9  ;;  %v468_v47 = vand.u32 4294901760, %v467_v40  ;;  %v1780_v48 = vpack.c.bf16 %v478_v14, %v466_v36  ;;  %v480_v49 = vand.u32 4294901760, %v479_v42  ;;  %v2249_v57 = vsub.f32 %v165_v12, %v2233_v38  ;;  %v34_v40 = vld [vmem:[%s2671_s1 + $0x60] sm:$0xff] }
  0x19   :  { %v474_v51 = vand.u32 4294901760, %v473_v43  ;;  %v485_v52 = vsub.f32 %v2214_v32, %v484_v44  ;;  %v1782_v53 = vpack.c.bf16 %v484_v44, %v472_v24  ;;  %v2251_v59 = vand.u32 4294901760, %v168_v39 }
  0x1a   :  { %291 = vmatmul.mubr.f32.gmra.mrb[4].mxu1 %v290_v23  ;;  %1781 = vmatprep.subr.bf16.mxu0 %v1780_v48  ;;  %v1756_v60 = vpack.c.bf16 %v480_v49, %v468_v47  ;;  %v312_v62 = vand.u32 4294901760, %v311_v46  ;;  %v322_v2 = vsub.f32 %v2217_v8, %v321_v41  ;;  %v332_v3 = vand.u32 4294901760, %v2231_v37  ;;  %v35_v47 = vld [vmem:[%s2671_s1 + $0x68] sm:$0xff] }
  0x1b   :  { %296 = vmatprep.mubr.f32.mxu1 %v2014_v9  ;;  %969 = vmatmul.mubr.f32.gmra.mrb[6].mxu0 %v299_v15  ;;  %v486_v61 = vand.u32 4294901760, %v485_v52  ;;  %v171_v10 = vsel %vm142_vm0, %v31_v54, 0  ;;  %v32_v15 = vld [vmem:[%s2671_s1 + $0x50] sm:$0xff]  ;;  %v343_v27 = vand.u32 4294901760, %v2249_v57  ;;  %v2264_v11 = vsub.f32 %v168_v39, %v2251_v59 }
  0x1c   :  { %974 = vmatprep.mubr.f32.mxu0 %v2014_v9  ;;  %1783 = vmatpush1.bf16.msra.mxu0 %v1782_v53  ;;  %v333_v29 = vsub.f32 %v2231_v37, %v332_v3  ;;  %v2267_v12 = vand.u32 4294901760, %v171_v10  ;;  %v1760_v13 = vpack.c.bf16 %v2091_v18, %v2089_v17  ;;  %v174_v23 = vsel %vm142_vm0, %v32_v15, 0 }
  0x1d   :  { %1785 = vmatprep.subr.bf16.mxu0 %v2087_v16  ;;  %v1758_v5 = vpack.c.bf16 %v486_v61, %v474_v51  ;;  %1757 = vmatprep.subr.bf16.mxu1 %v1756_v60  ;;  %v323_v16 = vand.u32 4294901760, %v322_v2  ;;  %v344_v36 = vsub.f32 %v2249_v57, %v343_v27  ;;  %v354_v14 = vand.u32 4294901760, %v2264_v11  ;;  %v36_v60 = vld [vmem:[%s2671_s1 + $0x70] sm:$0xff]  ;;  %v46_v61 = vld [vmem:[%s2672_s2] sm:$0xff] }
  0x1e   :  { %302 = vmatmul.mubr.f32.gmra.mrb[6].mxu1 %v301_v45  ;;  %v334_v17 = vand.u32 4294901760, %v333_v29  ;;  %v2282_v18 = vsub.f32 %v171_v10, %v2267_v12  ;;  %v2284_v24 = vand.u32 4294901760, %v174_v23  ;;  %v177_v39 = vsel %vm142_vm0, %v33_v34, 0  ;;  %v48_v29 = vld [vmem:[%s2672_s2 + $0x10] sm:$0xff] }
  0x1f   :  { %307 = vmatprep.mubr.f32.mxu1 %v2014_v9  ;;  %978 = vmatmul.mubr.f32.gmra.mrb[8].mxu0 %v310_v35  ;;  %v1762_v35 = vpack.c.bf16 %v2097_v21, %v2093_v19  ;;  %v355_v42 = vsub.f32 %v2264_v11, %v354_v14  ;;  %v2297_v45 = vand.u32 4294901760, %v177_v39  ;;  %v180_v46 = vsel %vm142_vm0, %v34_v40, 0  ;;  %v49_v40 = vld [vmem:[%s2672_s2 + $0x18] sm:$0xff] }
  0x20   :  { %983 = vmatprep.mubr.f32.mxu0 %v2014_v9  ;;  %1759 = vmatpush1.bf16.msra.mxu1 %v1758_v5  ;;  %v365_v43 = vand.u32 4294901760, %v2282_v18  ;;  %v2295_v44 = vsub.f32 %v174_v23, %v2284_v24  ;;  %v2305_v49 = vand.u32 4294901760, %v180_v46  ;;  %v183_v51 = vsel %vm142_vm0, %v35_v47, 0  ;;  %v57_v19 = vld [vmem:[%s2672_s2 + $0x58] sm:$0xff] }
  0x21   :  { %1761 = vmatprep.subr.bf16.mxu1 %v1760_v13  ;;  %v356_v48 = vand.u32 4294901760, %v355_v42  ;;  %v2311_v54 = vsub.f32 %v177_v39, %v2297_v45  ;;  %v2321_v2 = vand.u32 4294901760, %v183_v51  ;;  %v47_v13 = vld [vmem:[%s2672_s2 + $0x8] sm:$0xff]  ;;  %v1540_v21 = vld [vmem:[%s2673_s3 + $0x38] sm:$0xff] }
  0x22   :  { %313 = vmatmul.mubr.f32.gmra.mrb[8].mxu1 %v312_v62  ;;  %v366_v52 = vsub.f32 %v2282_v18, %v365_v43  ;;  %v376_v53 = vand.u32 4294901760, %v2295_v44  ;;  %v2015_v62 = vmov 0  }
  0x23   :  { %318 = vmatprep.mubr.f32.mxu1 %v2014_v9  ;;  %987 = vmatmul.mubr.f32.gmra.mrb[10].mxu0 %v321_v41  ;;  %v345_v41 = vand.u32 4294901760, %v344_v36  ;;  %v387_v15 = vand.u32 4294901760, %v2311_v54  ;;  %v2346_v39 = vsub.f32 %v183_v51, %v2321_v2  ;;  %v51_v51 = vld [vmem:[%s2672_s2 + $0x28] sm:$0xff] }
  0x24   :  { %992 = vmatprep.mubr.f32.mxu0 %v2014_v9  ;;  %1988 = vset.pattern.permute.xlu0 %v2015_v62  ;;  %v367_v5 = vand.u32 4294901760, %v366_v52  ;;  %v377_v10 = vsub.f32 %v2295_v44, %v376_v53  ;;  %v1533_v52 = vld [vmem:[%s2673_s3] sm:$0xff] }
  0x25   :  { %64 = vperm.xlu0 %1988, %v46_v61   ;;  %1989 = vset.pattern.permute.xlu1 %v2015_v62  ;;  %v409_v47 = vand.u32 4294901760, %v2346_v39 }
  0x26   :  { %324 = vmatmul.mubr.f32.gmra.mrb[10].mxu1 %v323_v16  ;;  %v37_v16 = vld [vmem:[%s2671_s1 + $0x78] sm:$0xff]  ;;  %74 = vperm.xlu1 %1989, %v48_v29   ;;  %v378_v36 = vand.u32 4294901760, %v377_v10  ;;  %v1535_v29 = vld [vmem:[%s2673_s3 + $0x10] sm:$0xff] }
  0x27   :  { %329 = vmatprep.mubr.f32.mxu1 %v2014_v9  ;;  %996 = vmatmul.mubr.f32.gmra.mrb[12].mxu0 %v332_v3  ;;  %v186_v3 = vsel %vm142_vm0, %v36_v60, 0  ;;  %v189_v34 = vsel %vm142_vm0, %v37_v16, 0  ;;  %v410_v60 = vsub.f32 %v2346_v39, %v409_v47 }
  0x28   :  { %1001 = vmatprep.mubr.f32.mxu0 %v2014_v9  ;;  %v2340_v23 = vand.u32 4294901760, %v186_v3  ;;  %v2356_v42 = vand.u32 4294901760, %v189_v34 }
  0x29   :  { %69 = vperm.xlu0 %1988, %v47_v13   ;;  %v411_v10 = vand.u32 4294901760, %v410_v60  ;;  %v53_v13 = vld [vmem:[%s2672_s2 + $0x38] sm:$0xff]  ;;  %v1545_v60 = vld [vmem:[%s2673_s3 + $0x60] sm:$0xff] }
  0x2a   :  { %335 = vmatmul.mubr.f32.gmra.mrb[12].mxu1 %v334_v17  ;;  %79 = vperm.xlu1 %1989, %v49_v40   ;;  %v2374_v62 = vsub.f32 %v189_v34, %v2356_v42 }
  0x2b   :  { %340 = vmatprep.mubr.f32.mxu1 %v2014_v9  ;;  %1005 = vmatmul.mubr.f32.gmra.mrb[14].mxu0 %v343_v27  ;;  %v2327_v27 = vsub.f32 %v180_v46, %v2305_v49 }
  0x2c   :  { %1010 = vmatprep.mubr.f32.mxu0 %v2014_v9  ;;  %v431_v16 = vand.u32 4294901760, %v2374_v62 }
  0x2d   :  { %v398_v17 = vand.u32 4294901760, %v2327_v27 }
  0x2e   :  { %346 = vmatmul.mubr.f32.gmra.mrb[14].mxu1 %v345_v41  ;;  %v50_v41 = vld [vmem:[%s2672_s2 + $0x20] sm:$0xff]  ;;  %89 = vperm.xlu1 %1989, %v51_v51   ;;  %v1764_v51 = vpack.c.bf16 %v2200_v28, %v2186_v6  ;;  %v59_v6 = vld [vmem:[%s2672_s2 + $0x68] sm:$0xff] }
  0x2f   :  { %351 = vmatprep.mubr.f32.mxu1 %v2014_v9  ;;  %1014 = vmatmul.mubr.f32.gmra.mrb[16].mxu0 %v354_v14  ;;  %v388_v14 = vsub.f32 %v2311_v54, %v387_v15  ;;  %v399_v46 = vsub.f32 %v2327_v27, %v398_v17  ;;  %v1542_v28 = vld [vmem:[%s2673_s3 + $0x48] sm:$0xff] }
  0x30   :  { %1019 = vmatprep.mubr.f32.mxu0 %v2014_v9  ;;  %84 = vperm.xlu0 %1988, %v50_v41   ;;  %v1537_v41 = vld [vmem:[%s2673_s3 + $0x20] sm:$0xff] }
  0x32   :  { %357 = vmatmul.mubr.f32.gmra.mrb[16].mxu1 %v356_v48  ;;  %v2361_v48 = vsub.f32 %v186_v3, %v2340_v23  ;;  %v1534_v3 = vld [vmem:[%s2673_s3 + $0x8] sm:$0xff] }
  0x33   :  { %362 = vmatprep.mubr.f32.mxu1 %v2014_v9  ;;  %1023 = vmatmul.mubr.f32.gmra.mrb[18].mxu0 %v365_v43  ;;  %v389_v43 = vand.u32 4294901760, %v388_v14  ;;  %v1536_v14 = vld [vmem:[%s2673_s3 + $0x18] sm:$0xff] }
  0x34   :  { %1028 = vmatprep.mubr.f32.mxu0 %v2014_v9  ;;  %1551 = vperm.xlu0 %1988, %v1533_v52   ;;  %v420_v61 = vand.u32 4294901760, %v2361_v48  ;;  %v1766_v52 = vpack.c.bf16 %v2214_v32, %v2205_v7  ;;  %v60_v7 = vld [vmem:[%s2672_s2 + $0x70] sm:$0xff] }
  0x35   :  { %1556 = vperm.xlu1 %1989, %v1534_v3   ;;  %v1543_v32 = vld [vmem:[%s2673_s3 + $0x50] sm:$0xff] }
  0x36   :  { %368 = vmatmul.mubr.f32.gmra.mrb[18].mxu1 %v367_v5  ;;  %v52_v5 = vld [vmem:[%s2672_s2 + $0x30] sm:$0xff] }
  0x37   :  { %373 = vmatprep.mubr.f32.mxu1 %v2014_v9  ;;  %1032 = vmatmul.mubr.f32.gmra.mrb[20].mxu0 %v376_v53  ;;  %v400_v53 = vand.u32 4294901760, %v399_v46  ;;  %v1538_v46 = vld [vmem:[%s2673_s3 + $0x28] sm:$0xff]  ;;  %v1547_v3 = vld [vmem:[%s2673_s3 + $0x70] sm:$0xff] }
  0x38   :  { %1037 = vmatprep.mubr.f32.mxu0 %v2014_v9  ;;  %94 = vperm.xlu0 %1988, %v52_v5   ;;  %v1548_v5 = vld [vmem:[%s2673_s3 + $0x78] sm:$0xff] }
  0x39   :  { %1561 = vperm.xlu1 %1989, %v1535_v29  }
  0x3a   :  { %379 = vmatmul.mubr.f32.gmra.mrb[20].mxu1 %v378_v36  ;;  %v432_v36 = vsub.f32 %v2374_v62, %v431_v16 }
  0x3b   :  { %384 = vmatprep.mubr.f32.mxu1 %v2014_v9  ;;  %1041 = vmatmul.mubr.f32.gmra.mrb[22].mxu0 %v387_v15  ;;  %v421_v15 = vsub.f32 %v2361_v48, %v420_v61 }
  0x3c   :  { %1046 = vmatprep.mubr.f32.mxu0 %v2014_v9  ;;  %99 = vperm.xlu0 %1988, %v53_v13   ;;  %v433_v40 = vand.u32 4294901760, %v432_v36 }
  0x3d   :  { %v422_v34 = vand.u32 4294901760, %v421_v15  ;;  %1566 = vperm.xlu1 %1989, %v1536_v14  }
  0x3e   :  { %390 = vmatmul.mubr.f32.gmra.mrb[22].mxu1 %v389_v43  ;;  %v55_v43 = vld [vmem:[%s2672_s2 + $0x48] sm:$0xff] }
  0x3f   :  { %395 = vmatprep.mubr.f32.mxu1 %v2014_v9  ;;  %1050 = vmatmul.mubr.f32.gmra.mrb[24].mxu0 %v398_v17  ;;  %v54_v17 = vld [vmem:[%s2672_s2 + $0x40] sm:$0xff] }
  0x40   :  { %1055 = vmatprep.mubr.f32.mxu0 %v2014_v9  ;;  %104 = vperm.xlu0 %1988, %v54_v17  }
  0x41   :  { %1571 = vperm.xlu1 %1989, %v1537_v41  }
  0x42   :  { %401 = vmatmul.mubr.f32.gmra.mrb[24].mxu1 %v400_v53  ;;  %v1544_v53 = vld [vmem:[%s2673_s3 + $0x58] sm:$0xff] }
  0x43   :  { %406 = vmatprep.mubr.f32.mxu1 %v2014_v9  ;;  %1059 = vmatmul.mubr.f32.gmra.mrb[26].mxu0 %v409_v47  ;;  %v56_v47 = vld [vmem:[%s2672_s2 + $0x50] sm:$0xff] }
  0x44   :  { %1064 = vmatprep.mubr.f32.mxu0 %v2014_v9  ;;  %109 = vperm.xlu0 %1988, %v55_v43  }
  0x45   :  { %1576 = vperm.xlu1 %1989, %v1538_v46  }
  0x46   :  { %412 = vmatmul.mubr.f32.gmra.mrb[26].mxu1 %v411_v10 }
  0x47   :  { %417 = vmatprep.mubr.f32.mxu1 %v2014_v9  ;;  %1068 = vmatmul.mubr.f32.gmra.mrb[28].mxu0 %v420_v61  ;;  %v1546_v61 = vld [vmem:[%s2673_s3 + $0x68] sm:$0xff] }
  0x48   :  { %1073 = vmatprep.mubr.f32.mxu0 %v2014_v9  ;;  %114 = vperm.xlu0 %1988, %v56_v47  }
  0x4a   :  { %423 = vmatmul.mubr.f32.gmra.mrb[28].mxu1 %v422_v34 }
  0x4b   :  { %428 = vmatprep.mubr.f32.mxu1 %v2014_v9  ;;  %1077 = vmatmul.mubr.f32.gmra.mrb[30].mxu0 %v431_v16 }
  0x4c   :  { %1171 = vmatprep.mubr.f32.mxu0 %v2014_v9  ;;  %119 = vperm.xlu0 %1988, %v57_v19  }
  0x4e   :  { %434 = vmatmul.mubr.f32.gmra.mrb[30].mxu1 %v433_v40 }
  0x4f   :  { %544 = vmatprep.mubr.f32.mxu1 %v2014_v9  ;;  %1173 = vmatmul.mubr.f32.vlgmr.msra.gmra.mrb[0].mxu0 %v2112_v26 }
  0x50   :  { %1178 = vmatprep.mubr.f32.mxu0 %v2014_v9  ;;  %1787 = vmatpush1.bf16.msra.mxu0 %v2095_v20  ;;  %v1539_v20 = vld [vmem:[%s2673_s3 + $0x30] sm:$0xff] }
  0x51   :  { %1789 = vmatprep.subr.bf16.mxu0 %v2103_v22  ;;  %1581 = vperm.xlu1 %1989, %v1539_v20   ;;  %v58_v22 = vld [vmem:[%s2672_s2 + $0x60] sm:$0xff] }
  0x52   :  { %546 = vmatmul.mubr.f32.vlgmr.msra.gmra.mrb[0].mxu1 %v2112_v26  ;;  %124 = vperm.xlu0 %1988, %v58_v22  }
  0x53   :  { %1763 = vmatpush1.bf16.msra.mxu1 %v1762_v35  ;;  %551 = vmatprep.mubr.f32.mxu1 %v2014_v9  ;;  %v61_v35 = vld [vmem:[%s2672_s2 + $0x78] sm:$0xff] }
  0x54   :  { %1180 = vmatmul.mubr.f32.gmra.mrb[2].mxu0 %v2152_v50  ;;  %1765 = vmatprep.subr.bf16.mxu1 %v1764_v51 }
  0x55   :  { %1185 = vmatprep.mubr.f32.mxu0 %v2014_v9  ;;  %1791 = vmatpush1.bf16.msra.mxu0 %v2126_v31  ;;  %v1541_v31 = vld [vmem:[%s2673_s3 + $0x40] sm:$0xff] }
  0x56   :  { %553 = vmatmul.mubr.f32.gmra.mrb[2].mxu1 %v2152_v50  ;;  %1586 = vperm.xlu1 %1989, %v1540_v21  }
  0x57   :  { %558 = vmatprep.mubr.f32.mxu1 %v2014_v9  ;;  %1767 = vmatpush1.bf16.msra.mxu1 %v1766_v52 }
  0x58   :  { %1187 = vmatmul.mubr.f32.gmra.mrb[4].mxu0 %v2157_v55  ;;  %129 = vperm.xlu0 %1988, %v59_v6  }
  0x59   :  { %1192 = vmatprep.mubr.f32.mxu0 %v2014_v9 }
  0x5a   :  { %560 = vmatmul.mubr.f32.gmra.mrb[4].mxu1 %v2157_v55  ;;  %1591 = vperm.xlu1 %1989, %v1541_v31  }
  0x5b   :  { %565 = vmatprep.mubr.f32.mxu1 %v2014_v9 }
  0x5c   :  { %1194 = vmatmul.mubr.f32.gmra.mrb[6].mxu0 %v2159_v56  ;;  %134 = vperm.xlu0 %1988, %v60_v7  }
  0x5d   :  { %1199 = vmatprep.mubr.f32.mxu0 %v2014_v9 }
  0x5e   :  { %567 = vmatmul.mubr.f32.gmra.mrb[6].mxu1 %v2159_v56  ;;  %1596 = vperm.xlu1 %1989, %v1542_v28  }
  0x5f   :  { %572 = vmatprep.mubr.f32.mxu1 %v2014_v9 }
  0x60   :  { %1201 = vmatmul.mubr.f32.gmra.mrb[8].mxu0 %v2176_v1  ;;  %139 = vperm.xlu0 %1988, %v61_v35  }
  0x61   :  { %1206 = vmatprep.mubr.f32.mxu0 %v2014_v9 }
  0x62   :  { %574 = vmatmul.mubr.f32.gmra.mrb[8].mxu1 %v2176_v1  ;;  %1601 = vperm.xlu1 %1989, %v1543_v32  }
  0x63   :  { %579 = vmatprep.mubr.f32.mxu1 %v2014_v9 }
  0x64   :  { %1208 = vmatmul.mubr.f32.gmra.mrb[10].mxu0 %v2180_v4  ;;  %1611 = vperm.xlu0 %1988, %v1545_v60  }
  0x65   :  { %1213 = vmatprep.mubr.f32.mxu0 %v2014_v9 }
  0x66   :  { %581 = vmatmul.mubr.f32.gmra.mrb[10].mxu1 %v2180_v4  ;;  %1606 = vperm.xlu1 %1989, %v1544_v53  }
  0x67   :  { %586 = vmatprep.mubr.f32.mxu1 %v2014_v9 }
  0x68   :  { %1215 = vmatmul.mubr.f32.gmra.mrb[12].mxu0 %v2209_v30  ;;  %1621 = vperm.xlu0 %1988, %v1547_v3  }
  0x69   :  { %1220 = vmatprep.mubr.f32.mxu0 %v2014_v9 }
  0x6a   :  { %588 = vmatmul.mubr.f32.gmra.mrb[12].mxu1 %v2209_v30  ;;  %1616 = vperm.xlu1 %1989, %v1546_v61  }
  0x6b   :  { %593 = vmatprep.mubr.f32.mxu1 %v2014_v9 }
  0x6c   :  { %1222 = vmatmul.mubr.f32.gmra.mrb[14].mxu0 %v2233_v38 }
  0x6d   :  { %1227 = vmatprep.mubr.f32.mxu0 %v2014_v9 }
  0x6e   :  { %595 = vmatmul.mubr.f32.gmra.mrb[14].mxu1 %v2233_v38  ;;  %1626 = vperm.xlu1 %1989, %v1548_v5  }
  0x6f   :  { %600 = vmatprep.mubr.f32.mxu1 %v2014_v9 }
  0x70   :  { %1229 = vmatmul.mubr.f32.gmra.mrb[16].mxu0 %v2251_v59 }
  0x71   :  { %1234 = vmatprep.mubr.f32.mxu0 %v2014_v9 }
  0x72   :  { %602 = vmatmul.mubr.f32.gmra.mrb[16].mxu1 %v2251_v59 }
  0x73   :  { %607 = vmatprep.mubr.f32.mxu1 %v2014_v9 }
  0x74   :  { %1236 = vmatmul.mubr.f32.gmra.mrb[18].mxu0 %v2267_v12 }
  0x75   :  { %1241 = vmatprep.mubr.f32.mxu0 %v2014_v9 }
  0x76   :  { %609 = vmatmul.mubr.f32.gmra.mrb[18].mxu1 %v2267_v12 }
  0x77   :  { %614 = vmatprep.mubr.f32.mxu1 %v2014_v9 }
  0x78   :  { %1243 = vmatmul.mubr.f32.gmra.mrb[20].mxu0 %v2284_v24 }
  0x79   :  { %1248 = vmatprep.mubr.f32.mxu0 %v2014_v9 }
  0x7a   :  { %616 = vmatmul.mubr.f32.gmra.mrb[20].mxu1 %v2284_v24 }
  0x7b   :  { %621 = vmatprep.mubr.f32.mxu1 %v2014_v9 }
  0x7c   :  { %1250 = vmatmul.mubr.f32.gmra.mrb[22].mxu0 %v2297_v45 }
  0x7d   :  { %1255 = vmatprep.mubr.f32.mxu0 %v2014_v9 }
  0x7e   :  { %623 = vmatmul.mubr.f32.gmra.mrb[22].mxu1 %v2297_v45 }
  0x7f   :  { %628 = vmatprep.mubr.f32.mxu1 %v2014_v9 }
  0x80   :  { %1257 = vmatmul.mubr.f32.gmra.mrb[24].mxu0 %v2305_v49 }
  0x81   :  { %1262 = vmatprep.mubr.f32.mxu0 %v2014_v9 }
  0x82   :  { %630 = vmatmul.mubr.f32.gmra.mrb[24].mxu1 %v2305_v49 }
  0x83   :  { %635 = vmatprep.mubr.f32.mxu1 %v2014_v9 }
  0x84   :  { %1264 = vmatmul.mubr.f32.gmra.mrb[26].mxu0 %v2321_v2 }
  0x85   :  { %1269 = vmatprep.mubr.f32.mxu0 %v2014_v9 }
  0x86   :  { %637 = vmatmul.mubr.f32.gmra.mrb[26].mxu1 %v2321_v2 }
  0x87   :  { %642 = vmatprep.mubr.f32.mxu1 %v2014_v9 }
  0x88   :  { %1271 = vmatmul.mubr.f32.gmra.mrb[28].mxu0 %v2340_v23 }
  0x89   :  { %1276 = vmatprep.mubr.f32.mxu0 %v2014_v9 }
  0x8a   :  { %644 = vmatmul.mubr.f32.gmra.mrb[28].mxu1 %v2340_v23 }
  0x8b   :  { %649 = vmatprep.mubr.f32.mxu1 %v2014_v9 }
  0x8c   :  { %1278 = vmatmul.mubr.f32.gmra.mrb[30].mxu0 %v2356_v42 }
  0x8d   :  { %1356 = vmatprep.mubr.f32.mxu0 %v2014_v9 }
  0x8e   :  { %651 = vmatmul.mubr.f32.gmra.mrb[30].mxu1 %v2356_v42 }
  0x8f   :  { %737 = vmatprep.mubr.f32.mxu1 %v2014_v9 }
  0x90   :  { %1358 = vmatmul.mubr.f32.vlgmr.msra.gmra.mrb[0].mxu0 %v2112_v26 }
  0x91   :  { %1363 = vmatprep.mubr.f32.mxu0 %v2014_v9 }
  0x92   :  { %740 = vmatmul.mubr.f32.vlgmr.msra.gmra.mrb[0].mxu1 %v2130_v33 }
  0x93   :  { %745 = vmatprep.mubr.f32.mxu1 %v2014_v9 }
  0x94   :  { %1365 = vmatmul.mubr.f32.gmra.mrb[2].mxu0 %v2152_v50 }
  0x95   :  { %1370 = vmatprep.mubr.f32.mxu0 %v2014_v9 }
  0x96   :  { %748 = vmatmul.mubr.f32.gmra.mrb[2].mxu1 %v2162_v58 }
  0x97   :  { %753 = vmatprep.mubr.f32.mxu1 %v2014_v9 }
  0x98   :  { %1372 = vmatmul.mubr.f32.gmra.mrb[4].mxu0 %v2157_v55 }
  0x99   :  { %1377 = vmatprep.mubr.f32.mxu0 %v2014_v9 }
  0x9a   :  { %756 = vmatmul.mubr.f32.gmra.mrb[4].mxu1 %v2171_v63 }
  0x9b   :  { %761 = vmatprep.mubr.f32.mxu1 %v2014_v9 }
  0x9c   :  { %1379 = vmatmul.mubr.f32.gmra.mrb[6].mxu0 %v2159_v56 }
  0x9d   :  { %1384 = vmatprep.mubr.f32.mxu0 %v2014_v9 }
  0x9e   :  { %764 = vmatmul.mubr.f32.gmra.mrb[6].mxu1 %v2174_v0 }
  0x9f   :  { %769 = vmatprep.mubr.f32.mxu1 %v2014_v9 }
  0xa0   :  { %1386 = vmatmul.mubr.f32.gmra.mrb[8].mxu0 %v2176_v1 }
  0xa1   :  { %1391 = vmatprep.mubr.f32.mxu0 %v2014_v9 }
  0xa2   :  { %772 = vmatmul.mubr.f32.gmra.mrb[8].mxu1 %v2192_v25 }
  0xa3   :  { %777 = vmatprep.mubr.f32.mxu1 %v2014_v9 }
  0xa4   :  { %1393 = vmatmul.mubr.f32.gmra.mrb[10].mxu0 %v2180_v4  ;;  %v65_v26 = vpop.permute.xlu0 %64 }
  0xa5   :  { %1398 = vmatprep.mubr.f32.mxu0 %v2014_v9  ;;  %v75_v33 = vpop.permute.xlu1 %74 }
  0xa6   :  { %780 = vmatmul.mubr.f32.gmra.mrb[10].mxu1 %v2217_v8 }
  0xa7   :  { %785 = vmatprep.mubr.f32.mxu1 %v2014_v9 }
  0xa8   :  { %1400 = vmatmul.mubr.f32.gmra.mrb[12].mxu0 %v2209_v30  ;;  %v70_v50 = vpop.permute.xlu0 %69 }
  0xa9   :  { %1405 = vmatprep.mubr.f32.mxu0 %v2014_v9  ;;  %v80_v55 = vpop.permute.xlu1 %79 }
  0xaa   :  { %788 = vmatmul.mubr.f32.gmra.mrb[12].mxu1 %v2231_v37 }
  0xab   :  { %793 = vmatprep.mubr.f32.mxu1 %v2014_v9 }
  0xac   :  { %1407 = vmatmul.mubr.f32.gmra.mrb[14].mxu0 %v2233_v38 }
  0xad   :  { %1412 = vmatprep.mubr.f32.mxu0 %v2014_v9  ;;  %v2601_v58 = vpop.permute.xlu1 %89 }
  0xae   :  { %796 = vmatmul.mubr.f32.gmra.mrb[14].mxu1 %v2249_v57 }
  0xaf   :  { %801 = vmatprep.mubr.f32.mxu1 %v2014_v9  ;;  %v2599_v56 = vpop.permute.xlu0 %84 }
  0xb0   :  { %1414 = vmatmul.mubr.f32.gmra.mrb[16].mxu0 %v2251_v59 }
  0xb1   :  { %1419 = vmatprep.mubr.f32.mxu0 %v2014_v9 }
  0xb2   :  { %804 = vmatmul.mubr.f32.gmra.mrb[16].mxu1 %v2264_v11 }
  0xb3   :  { %809 = vmatprep.mubr.f32.mxu1 %v2014_v9  ;;  %v1552_v63 = vpop.permute.xlu0 %1551 }
  0xb4   :  { %1421 = vmatmul.mubr.f32.gmra.mrb[18].mxu0 %v2267_v12  ;;  %v1557_v0 = vpop.permute.xlu1 %1556 }
  0xb5   :  { %1426 = vmatprep.mubr.f32.mxu0 %v2014_v9 }
  0xb6   :  { %812 = vmatmul.mubr.f32.gmra.mrb[18].mxu1 %v2282_v18 }
  0xb7   :  { %817 = vmatprep.mubr.f32.mxu1 %v2014_v9  ;;  %v2603_v1 = vpop.permute.xlu0 %94 }
  0xb8   :  { %1428 = vmatmul.mubr.f32.gmra.mrb[20].mxu0 %v2284_v24  ;;  %v2605_v4 = vpop.permute.xlu1 %1561 }
  0xb9   :  { %1433 = vmatprep.mubr.f32.mxu0 %v2014_v9 }
  0xba   :  { %820 = vmatmul.mubr.f32.gmra.mrb[20].mxu1 %v2295_v44 }
  0xbb   :  { %825 = vmatprep.mubr.f32.mxu1 %v2014_v9  ;;  %v2607_v38 = vpop.permute.xlu0 %99 }
  0xbc   :  { %1435 = vmatmul.mubr.f32.gmra.mrb[22].mxu0 %v2297_v45  ;;  %v2609_v18 = vpop.permute.xlu1 %1566 }
  0xbd   :  { %1440 = vmatprep.mubr.f32.mxu0 %v2014_v9 }
  0xbe   :  { %828 = vmatmul.mubr.f32.gmra.mrb[22].mxu1 %v2311_v54 }
  0xbf   :  { %833 = vmatprep.mubr.f32.mxu1 %v2014_v9 }
  0xc0   :  { %1442 = vmatmul.mubr.f32.gmra.mrb[24].mxu0 %v2305_v49  ;;  %v2613_v34 = vpop.permute.xlu1 %1571 }
  0xc1   :  { %1447 = vmatprep.mubr.f32.mxu0 %v2014_v9 }
  0xc2   :  { %836 = vmatmul.mubr.f32.gmra.mrb[24].mxu1 %v2327_v27 }
  0xc3   :  { %841 = vmatprep.mubr.f32.mxu1 %v2014_v9 }
  0xc4   :  { %1449 = vmatmul.mubr.f32.gmra.mrb[26].mxu0 %v2321_v2 }
  0xc5   :  { %1454 = vmatprep.mubr.f32.mxu0 %v2014_v9 }
  0xc6   :  { %844 = vmatmul.mubr.f32.gmra.mrb[26].mxu1 %v2346_v39 }
  0xc7   :  { %849 = vmatprep.mubr.f32.mxu1 %v2014_v9 }
  0xc8   :  { %1456 = vmatmul.mubr.f32.gmra.mrb[28].mxu0 %v2340_v23 }
  0xc9   :  { %1461 = vmatprep.mubr.f32.mxu0 %v2014_v9 }
  0xca   :  { %852 = vmatmul.mubr.f32.gmra.mrb[28].mxu1 %v2361_v48  ;;  %v2611_v48 = vpop.permute.xlu0 %104 }
  0xcb   :  { %857 = vmatprep.mubr.f32.mxu1 %v2014_v9 }
  0xcc   :  { %1463 = vmatmul.mubr.f32.gmra.mrb[30].mxu0 %v2356_v42 }
  0xce   :  { %860 = vmatmul.mubr.f32.gmra.mrb[30].mxu1 %v2374_v62  ;;  %v2615_v6 = vpop.permute.xlu0 %109 }
 0x163   :  { %v1359_v25 = vpop.f32.mrb[0].mxu0 }
 0x164   :  { %v1361_v9 = vpop.f32.mrb[1].mxu0 }
 0x165   :  { %v741_v30 = vpop.f32.mrb[0].mxu1 }
 0x166   :  { %v1792_v8 = vadd.f32 %v741_v30, %v65_v26  ;;  %v743_v37 = vpop.f32.mrb[1].mxu1 }
 0x167   :  { %v1794_v57 = vadd.f32 %v743_v37, %v65_v26  ;;  %v1366_v59 = vpop.f32.mrb[2].mxu0  ;;  %v1577_v26 = vpop.permute.xlu1 %1576 }
 0x168   :  { %v1793_v11 = vadd.f32 %v1792_v8, %v1359_v25  ;;  %v1368_v12 = vpop.f32.mrb[3].mxu0 }
 0x169   :  { %v1795_v24 = vadd.f32 %v1794_v57, %v1361_v9  ;;  %v749_v44 = vpop.f32.mrb[2].mxu1 }
 0x16a   :  { %v1469_v45 = vmul.f32 0.01, %v1793_v11  ;;  %v1796_v49 = vadd.f32 %v749_v44, %v70_v50  ;;  %v751_v54 = vpop.f32.mrb[3].mxu1 }
 0x16b   :  { %v1470_v2 = vmul.f32 0.01, %v1795_v24  ;;  %v1798_v27 = vadd.f32 %v751_v54, %v70_v50  ;;  %v1373_v23 = vpop.f32.mrb[4].mxu0 }
 0x16c   :  { %v1797_v39 = vadd.f32 %v1796_v49, %v1366_v59  ;;  %v1375_v42 = vpop.f32.mrb[5].mxu0  ;;  %v1501_v15 = vmax.f32 %v1793_v11, %v1469_v45  ;;  %v2621_v45 = vpop.permute.xlu0 %114 }
 0x16d   :  { %v1799_v62 = vadd.f32 %v1798_v27, %v1368_v12  ;;  %v757_v10 = vpop.f32.mrb[4].mxu1  ;;  %v1502_v36 = vmax.f32 %v1795_v24, %v1470_v2 }
 0x16e   :  { %v1471_v16 = vmul.f32 0.01, %v1797_v39  ;;  %v1800_v29 = vadd.f32 %v757_v10, %v75_v33  ;;  %v759_v13 = vpop.f32.mrb[5].mxu1  ;;  %v1629_v20 = vmul.f32 %v1552_v63, %v1501_v15 }
 0x16f   :  { %v1472_v14 = vmul.f32 0.01, %v1799_v62  ;;  %v1802_v17 = vadd.f32 %v759_v13, %v75_v33  ;;  %v1380_v40 = vpop.f32.mrb[6].mxu0  ;;  %v1630_v28 = vmul.f32 %v1552_v63, %v1502_v36 }
 0x170   :  { %v1503_v41 = vmax.f32 %v1797_v39, %v1471_v16  ;;  %v1801_v43 = vadd.f32 %v1800_v29, %v1373_v23  ;;  %v1382_v46 = vpop.f32.mrb[7].mxu0 }
 0x171   :  { %v1504_v47 = vmax.f32 %v1799_v62, %v1472_v14  ;;  %v1803_v51 = vadd.f32 %v1802_v17, %v1375_v42  ;;  %v765_v52 = vpop.f32.mrb[6].mxu1  ;;  %v1582_v62 = vpop.permute.xlu1 %1581 }
 0x172   :  { %v1631_v19 = vmul.f32 %v1557_v0, %v1503_v41  ;;  %v1473_v21 = vmul.f32 0.01, %v1801_v43  ;;  %v1804_v22 = vadd.f32 %v765_v52, %v80_v55  ;;  %v767_v31 = vpop.f32.mrb[7].mxu1 }
 0x173   :  { %v1632_v7 = vmul.f32 %v1557_v0, %v1504_v47  ;;  %v1474_v32 = vmul.f32 0.01, %v1803_v51  ;;  %v1806_v35 = vadd.f32 %v767_v31, %v80_v55  ;;  %v1387_v53 = vpop.f32.mrb[8].mxu0 }
 0x174   :  { %v1661_v60 = vadd.f32 %v1631_v19, %v1629_v20  ;;  %v1505_v61 = vmax.f32 %v1801_v43, %v1473_v21  ;;  %v1805_v3 = vadd.f32 %v1804_v22, %v1380_v40  ;;  %v1389_v5 = vpop.f32.mrb[9].mxu0  ;;  %v2629_v20 = vpop.permute.xlu0 %119 }
 0x175   :  { %v1682_v33 = vadd.f32 %v1632_v7, %v1630_v28  ;;  %v1506_v50 = vmax.f32 %v1803_v51, %v1474_v32  ;;  %v1807_v25 = vadd.f32 %v1806_v35, %v1382_v46  ;;  %v773_v9 = vpop.f32.mrb[8].mxu1  ;;  %v1587_v32 = vpop.permute.xlu1 %1586 }
 0x176   :  { %v1633_v30 = vmul.f32 %v2605_v4, %v1505_v61  ;;  %v1475_v8 = vmul.f32 0.01, %v1805_v3  ;;  %v1808_v37 = vadd.f32 %v773_v9, %v2599_v56  ;;  %v775_v57 = vpop.f32.mrb[9].mxu1 }
 0x177   :  { %v1634_v63 = vmul.f32 %v2605_v4, %v1506_v50  ;;  %v1476_v0 = vmul.f32 0.01, %v1807_v25  ;;  %v1810_v55 = vadd.f32 %v775_v57, %v2599_v56  ;;  %v1394_v59 = vpop.f32.mrb[10].mxu0 }
 0x178   :  { %v1662_v11 = vadd.f32 %v1661_v60, %v1633_v30  ;;  %v1507_v12 = vmax.f32 %v1805_v3, %v1475_v8  ;;  %v1809_v24 = vadd.f32 %v1808_v37, %v1387_v53  ;;  %v1396_v44 = vpop.f32.mrb[11].mxu0 }
 0x179   :  { %v1683_v49 = vadd.f32 %v1682_v33, %v1634_v63  ;;  %v1508_v54 = vmax.f32 %v1807_v25, %v1476_v0  ;;  %v1811_v2 = vadd.f32 %v1810_v55, %v1389_v5  ;;  %v781_v27 = vpop.f32.mrb[10].mxu1  ;;  %v2635_v63 = vpop.permute.xlu0 %124 }
 0x17a   :  { %v1635_v23 = vmul.f32 %v2609_v18, %v1507_v12  ;;  %v1477_v39 = vmul.f32 0.01, %v1809_v24  ;;  %v1812_v42 = vadd.f32 %v781_v27, %v2601_v58  ;;  %v783_v4 = vpop.f32.mrb[11].mxu1 }
 0x17b   :  { %v1636_v56 = vmul.f32 %v2609_v18, %v1508_v54  ;;  %v1478_v10 = vmul.f32 0.01, %v1811_v2  ;;  %v1814_v15 = vadd.f32 %v783_v4, %v2601_v58  ;;  %v1401_v16 = vpop.f32.mrb[12].mxu0 }
 0x17c   :  { %v1663_v29 = vadd.f32 %v1662_v11, %v1635_v23  ;;  %v1509_v13 = vmax.f32 %v1809_v24, %v1477_v39  ;;  %v1813_v36 = vadd.f32 %v1812_v42, %v1394_v59  ;;  %v1403_v14 = vpop.f32.mrb[13].mxu0 }
 0x17d   :  { %v1684_v17 = vadd.f32 %v1683_v49, %v1636_v56  ;;  %v1510_v40 = vmax.f32 %v1811_v2, %v1478_v10  ;;  %v1815_v41 = vadd.f32 %v1814_v15, %v1396_v44  ;;  %v789_v43 = vpop.f32.mrb[12].mxu1 }
 0x17e   :  { %v1637_v46 = vmul.f32 %v2613_v34, %v1509_v13  ;;  %v1479_v47 = vmul.f32 0.01, %v1813_v36  ;;  %v1816_v51 = vadd.f32 %v789_v43, %v2603_v1  ;;  %v791_v52 = vpop.f32.mrb[13].mxu1 }
 0x17f   :  { %v1638_v18 = vmul.f32 %v2613_v34, %v1510_v40  ;;  %v1480_v58 = vmul.f32 0.01, %v1815_v41  ;;  %v1818_v19 = vadd.f32 %v791_v52, %v2603_v1  ;;  %v1408_v21 = vpop.f32.mrb[14].mxu0 }
 0x180   :  { %v1664_v22 = vadd.f32 %v1663_v29, %v1637_v46  ;;  %v1511_v31 = vmax.f32 %v1813_v36, %v1479_v47  ;;  %v1817_v28 = vadd.f32 %v1816_v51, %v1401_v16  ;;  %v1410_v7 = vpop.f32.mrb[15].mxu0 }
 0x181   :  { %v1685_v35 = vadd.f32 %v1684_v17, %v1638_v18  ;;  %v1512_v53 = vmax.f32 %v1815_v41, %v1480_v58  ;;  %v1819_v60 = vadd.f32 %v1818_v19, %v1403_v14  ;;  %v797_v61 = vpop.f32.mrb[14].mxu1  ;;  %v2640_v17 = vpop.permute.xlu0 %129 }
 0x182   :  { %v1639_v3 = vmul.f32 %v1577_v26, %v1511_v31  ;;  %v1481_v5 = vmul.f32 0.01, %v1817_v28  ;;  %v1820_v33 = vadd.f32 %v797_v61, %v2607_v38  ;;  %v799_v50 = vpop.f32.mrb[15].mxu1 }
 0x183   :  { %v1640_v25 = vmul.f32 %v1577_v26, %v1512_v53  ;;  %v1482_v34 = vmul.f32 0.01, %v1819_v60  ;;  %v1822_v9 = vadd.f32 %v799_v50, %v2607_v38  ;;  %v1415_v1 = vpop.f32.mrb[16].mxu0  ;;  %v1592_v26 = vpop.permute.xlu1 %1591 }
 0x184   :  { %v1665_v30 = vadd.f32 %v1664_v22, %v1639_v3  ;;  %v1513_v8 = vmax.f32 %v1817_v28, %v1481_v5  ;;  %v1821_v37 = vadd.f32 %v1820_v33, %v1408_v21  ;;  %v1417_v57 = vpop.f32.mrb[17].mxu0 }
 0x185   :  { %v1686_v0 = vadd.f32 %v1685_v35, %v1640_v25  ;;  %v1514_v55 = vmax.f32 %v1819_v60, %v1482_v34  ;;  %v1823_v59 = vadd.f32 %v1822_v9, %v1410_v7  ;;  %v805_v11 = vpop.f32.mrb[16].mxu1  ;;  %v2645_v33 = vpop.permute.xlu0 %134 }
 0x186   :  { %v1641_v12 = vmul.f32 %v1582_v62, %v1513_v8  ;;  %v1483_v24 = vmul.f32 0.01, %v1821_v37  ;;  %v1824_v44 = vadd.f32 %v805_v11, %v2611_v48  ;;  %v807_v49 = vpop.f32.mrb[17].mxu1 }
 0x187   :  { %v1642_v54 = vmul.f32 %v1582_v62, %v1514_v55  ;;  %v1484_v2 = vmul.f32 0.01, %v1823_v59  ;;  %v1826_v38 = vadd.f32 %v807_v49, %v2611_v48  ;;  %v1422_v27 = vpop.f32.mrb[18].mxu0  ;;  %v1597_v52 = vpop.permute.xlu1 %1596 }
 0x188   :  { %v1666_v23 = vadd.f32 %v1665_v30, %v1641_v12  ;;  %v1515_v39 = vmax.f32 %v1821_v37, %v1483_v24  ;;  %v1825_v42 = vadd.f32 %v1824_v44, %v1415_v1  ;;  %v1424_v4 = vpop.f32.mrb[19].mxu0 }
 0x189   :  { %v1687_v56 = vadd.f32 %v1686_v0, %v1642_v54  ;;  %v1516_v10 = vmax.f32 %v1823_v59, %v1484_v2  ;;  %v1827_v15 = vadd.f32 %v1826_v38, %v1417_v57  ;;  %v813_v16 = vpop.f32.mrb[18].mxu1 }
 0x18a   :  { %v1643_v29 = vmul.f32 %v1587_v32, %v1515_v39  ;;  %v1485_v13 = vmul.f32 0.01, %v1825_v42  ;;  %v1828_v36 = vadd.f32 %v813_v16, %v2615_v6  ;;  %v815_v14 = vpop.f32.mrb[19].mxu1 }
 0x18b   :  { %v1644_v62 = vmul.f32 %v1587_v32, %v1516_v10  ;;  %v1486_v40 = vmul.f32 0.01, %v1827_v15  ;;  %v1830_v48 = vadd.f32 %v815_v14, %v2615_v6  ;;  %v1429_v41 = vpop.f32.mrb[20].mxu0  ;;  %v1602_v57 = vpop.permute.xlu1 %1601 }
 0x18c   :  { %v1667_v43 = vadd.f32 %v1666_v23, %v1643_v29  ;;  %v1517_v46 = vmax.f32 %v1825_v42, %v1485_v13  ;;  %v1829_v47 = vadd.f32 %v1828_v36, %v1422_v27  ;;  %v1431_v51 = vpop.f32.mrb[21].mxu0  ;;  %v140_v42 = vpop.permute.xlu0 %139 }
 0x18d   :  { %v1688_v18 = vadd.f32 %v1687_v56, %v1644_v62  ;;  %v1518_v58 = vmax.f32 %v1827_v15, %v1486_v40  ;;  %v1831_v19 = vadd.f32 %v1830_v48, %v1424_v4  ;;  %v821_v21 = vpop.f32.mrb[20].mxu1 }
 0x18e   :  { %v1645_v22 = vmul.f32 %v1592_v26, %v1517_v46  ;;  %v1487_v31 = vmul.f32 0.01, %v1829_v47  ;;  %v1832_v28 = vadd.f32 %v821_v21, %v2621_v45  ;;  %v823_v7 = vpop.f32.mrb[21].mxu1 }
 0x18f   :  { %v1646_v35 = vmul.f32 %v1592_v26, %v1518_v58  ;;  %v1488_v32 = vmul.f32 0.01, %v1831_v19  ;;  %v1834_v53 = vadd.f32 %v823_v7, %v2621_v45  ;;  %v1436_v6 = vpop.f32.mrb[22].mxu0  ;;  %v1607_v36 = vpop.permute.xlu1 %1606 }
 0x190   :  { %v1668_v60 = vadd.f32 %v1667_v43, %v1645_v22  ;;  %v1519_v61 = vmax.f32 %v1829_v47, %v1487_v31  ;;  %v1833_v3 = vadd.f32 %v1832_v28, %v1429_v41  ;;  %v1438_v5 = vpop.f32.mrb[23].mxu0  ;;  %v1612_v31 = vpop.permute.xlu0 %1611 }
 0x191   :  { %v1689_v50 = vadd.f32 %v1688_v18, %v1646_v35  ;;  %v1520_v25 = vmax.f32 %v1831_v19, %v1488_v32  ;;  %v1835_v34 = vadd.f32 %v1834_v53, %v1431_v51  ;;  %v829_v9 = vpop.f32.mrb[22].mxu1 }
 0x192   :  { %v1647_v1 = vmul.f32 %v1597_v52, %v1519_v61  ;;  %v1489_v30 = vmul.f32 0.01, %v1833_v3  ;;  %v1836_v8 = vadd.f32 %v829_v9, %v2629_v20  ;;  %v831_v37 = vpop.f32.mrb[23].mxu1 }
 0x193   :  { %v1648_v0 = vmul.f32 %v1597_v52, %v1520_v25  ;;  %v1490_v55 = vmul.f32 0.01, %v1835_v34  ;;  %v1838_v45 = vadd.f32 %v831_v37, %v2629_v20  ;;  %v1443_v59 = vpop.f32.mrb[24].mxu0 }
 0x194   :  { %v1669_v11 = vadd.f32 %v1668_v60, %v1647_v1  ;;  %v1521_v12 = vmax.f32 %v1833_v3, %v1489_v30  ;;  %v1837_v24 = vadd.f32 %v1836_v8, %v1436_v6  ;;  %v1445_v44 = vpop.f32.mrb[25].mxu0  ;;  %v1617_v30 = vpop.permute.xlu1 %1616 }
 0x195   :  { %v1690_v49 = vadd.f32 %v1689_v50, %v1648_v0  ;;  %v1522_v26 = vmax.f32 %v1835_v34, %v1490_v55  ;;  %v1839_v54 = vadd.f32 %v1838_v45, %v1438_v5  ;;  %v837_v2 = vpop.f32.mrb[24].mxu1 }
 0x196   :  { %v1649_v38 = vmul.f32 %v1602_v57, %v1521_v12  ;;  %v1491_v27 = vmul.f32 0.01, %v1837_v24  ;;  %v1840_v23 = vadd.f32 %v837_v2, %v2635_v63  ;;  %v839_v39 = vpop.f32.mrb[25].mxu1 }
 0x197   :  { %v1650_v4 = vmul.f32 %v1602_v57, %v1522_v26  ;;  %v1492_v56 = vmul.f32 0.01, %v1839_v54  ;;  %v1842_v10 = vadd.f32 %v839_v39, %v2635_v63  ;;  %v1450_v20 = vpop.f32.mrb[26].mxu0 }
 0x198   :  { %v1670_v15 = vadd.f32 %v1669_v11, %v1649_v38  ;;  %v1523_v16 = vmax.f32 %v1837_v24, %v1491_v27  ;;  %v1841_v29 = vadd.f32 %v1840_v23, %v1443_v59  ;;  %v1452_v13 = vpop.f32.mrb[27].mxu0 }
 0x199   :  { %v1691_v14 = vadd.f32 %v1690_v49, %v1650_v4  ;;  %v1524_v62 = vmax.f32 %v1839_v54, %v1492_v56  ;;  %v1843_v40 = vadd.f32 %v1842_v10, %v1445_v44  ;;  %v845_v48 = vpop.f32.mrb[26].mxu1  ;;  %v1622_v54 = vpop.permute.xlu0 %1621 }
 0x19a   :  { %v1651_v41 = vmul.f32 %v1607_v36, %v1523_v16  ;;  %v1493_v43 = vmul.f32 0.01, %v1841_v29  ;;  %v1844_v46 = vadd.f32 %v845_v48, %v2640_v17  ;;  %v847_v47 = vpop.f32.mrb[27].mxu1 }
 0x19b   :  { %v1652_v51 = vmul.f32 %v1607_v36, %v1524_v62  ;;  %v1494_v52 = vmul.f32 0.01, %v1843_v40  ;;  %v1846_v18 = vadd.f32 %v847_v47, %v2640_v17  ;;  %v1457_v63 = vpop.f32.mrb[28].mxu0  ;;  %v2016_v47 = vmov 1966171168  }
 0x19c   :  { %v1671_v58 = vadd.f32 %v1670_v15, %v1651_v41  ;;  %v1525_v19 = vmax.f32 %v1841_v29, %v1493_v43  ;;  %v1845_v21 = vadd.f32 %v1844_v46, %v1450_v20  ;;  %v1459_v22 = vpop.f32.mrb[29].mxu0  ;;  %v1627_v15 = vpop.permute.xlu1 %1626 }
 0x19d   :  { %v1692_v28 = vadd.f32 %v1691_v14, %v1652_v51  ;;  %v1526_v7 = vmax.f32 %v1843_v40, %v1494_v52  ;;  %v1847_v35 = vadd.f32 %v1846_v18, %v1452_v13  ;;  %v853_v32 = vpop.f32.mrb[28].mxu1  ;;  %v1711_v51 = vunpack.c.l.s4 %v2016_v47 }
 0x19e   :  { %v1653_v53 = vmul.f32 %v1612_v31, %v1525_v19  ;;  %v1495_v6 = vmul.f32 0.01, %v1845_v21  ;;  %v1848_v60 = vadd.f32 %v853_v32, %v2645_v33  ;;  %v855_v61 = vpop.f32.mrb[29].mxu1  ;;  %v1713_v52 = vlaneseq }
 0x19f   :  { %v1654_v3 = vmul.f32 %v1612_v31, %v1526_v7  ;;  %v1496_v5 = vmul.f32 0.01, %v1847_v35  ;;  %v1850_v50 = vadd.f32 %v855_v61, %v2645_v33  ;;  %v1464_v17 = vpop.f32.mrb[30].mxu0 }
 0x1a0   :  { %v1672_v25 = vadd.f32 %v1671_v58, %v1653_v53  ;;  %v1527_v34 = vmax.f32 %v1845_v21, %v1495_v6  ;;  %v1849_v9 = vadd.f32 %v1848_v60, %v1457_v63  ;;  %v1466_v1 = vpop.f32.mrb[31].mxu0  ;;  %v1704_v21 = vstv %s2674_s4 }
 0x1a1   :  { %v1693_v8 = vadd.f32 %v1692_v28, %v1654_v3  ;;  %v1528_v37 = vmax.f32 %v1847_v35, %v1496_v5  ;;  %v1851_v57 = vadd.f32 %v1850_v50, %v1459_v22  ;;  %v861_v0 = vpop.f32.mrb[30].mxu1  ;;  %v1712_v22 = vunpack.c.0.s8 %v1711_v51 }
 0x1a2   :  { %v1655_v55 = vmul.f32 %v1617_v30, %v1527_v34  ;;  %v1497_v45 = vmul.f32 0.01, %v1849_v9  ;;  %v1852_v59 = vadd.f32 %v861_v0, %v140_v42  ;;  %v863_v11 = vpop.f32.mrb[31].mxu1  ;;  %v1714_v31 = vshrl.u32 %v1713_v52, 7 }
 0x1a3   :  { %v1656_v12 = vmul.f32 %v1617_v30, %v1528_v37  ;;  %v1498_v24 = vmul.f32 0.01, %v1851_v57  ;;  %v1854_v44 = vadd.f32 %v863_v11, %v140_v42  ;;  %vm1727_vm1 = vcmp.lt.s32.totalorder %v1713_v52, 256 }
 0x1a4   :  { %v1673_v49 = vadd.f32 %v1672_v25, %v1655_v55  ;;  %v1529_v26 = vmax.f32 %v1849_v9, %v1497_v45  ;;  %v1853_v33 = vadd.f32 %v1852_v59, %v1464_v17  ;;  %v1715_v53 = vsub.s32 %v1712_v22, %v1714_v31 }
 0x1a5   :  { %v1694_v2 = vadd.f32 %v1693_v8, %v1656_v12  ;;  %v1530_v38 = vmax.f32 %v1851_v57, %v1498_v24  ;;  %v1855_v27 = vadd.f32 %v1854_v44, %v1466_v1 }
 0x1a6   :  { %v1657_v23 = vmul.f32 %v1622_v54, %v1529_v26  ;;  %v1499_v39 = vmul.f32 0.01, %v1853_v33 }
 0x1a7   :  { %v1658_v4 = vmul.f32 %v1622_v54, %v1530_v38  ;;  %v1500_v56 = vmul.f32 0.01, %v1855_v27 }
 0x1a8   :  { %v1674_v10 = vadd.f32 %v1673_v49, %v1657_v23  ;;  %v1531_v20 = vmax.f32 %v1853_v33, %v1499_v39 }
 0x1a9   :  { %v1695_v16 = vadd.f32 %v1694_v2, %v1658_v4  ;;  %v1532_v29 = vmax.f32 %v1855_v27, %v1500_v56 }
 0x1aa   :  { %v1659_v13 = vmul.f32 %v1627_v15, %v1531_v20 }
 0x1ab   :  { %v1660_v36 = vmul.f32 %v1627_v15, %v1532_v29 }
 0x1ac   :  { %v1675_v14 = vadd.f32 %v1674_v10, %v1659_v13 }
 0x1ad   :  { %v1696_v42 = vadd.f32 %v1695_v16, %v1660_v36 }
 0x1ae   :  { %v1676_v62 = vrot.slane %v1675_v14, 4 }
 0x1af   :  { %v1697_v40 = vrot.slane %v1696_v42, 4 }
 0x1b0   :  { %v1677_v48 = vadd.f32 %v1676_v62, %v1675_v14 }
 0x1b1   :  { %v1698_v41 = vadd.f32 %v1697_v40, %v1696_v42 }
 0x1b2   :  { %v1678_v43 = vrot.slane %v1677_v48, 2 }
 0x1b3   :  { %v1699_v46 = vrot.slane %v1698_v41, 2 }
 0x1b4   :  { %v1679_v18 = vadd.f32 %v1678_v43, %v1677_v48 }
 0x1b5   :  { %v1700_v63 = vadd.f32 %v1699_v46, %v1698_v41 }
 0x1b6   :  { %v1680_v58 = vrot.slane %v1679_v18, 1 }
 0x1b7   :  { %v1701_v19 = vrot.slane %v1700_v63, 1 }
 0x1b8   :  { %v1681_v28 = vadd.f32 %v1680_v58, %v1679_v18 }
 0x1b9   :  { %v1702_v7 = vadd.f32 %v1701_v19, %v1700_v63 }
 0x1ba   :  { %v1705_v35 = vadd.f32 %v1704_v21, %v1681_v28 }
 0x1bb   :  { %v1706_v32 = vadd.f32 %v1704_v21, %v1702_v7 }
 0x1bd   :  { %v1709_v6 = vcombine.low %v1705_v35, %v1706_v32 }
 0x1bf   :  { %v1716_v60 = vrot.slane %v1709_v6, %v1715_v53 }
 0x1c1   :  { %v1723_v61 = vrot.slane %v1716_v60, %v1715_v53 }
 0x1c3   :  { %1729 = vst.msk [vmem:[#allocation3] sm:$0x3] %vm1727_vm1, %v1723_v61 }
 0x1c4   :  { %2001 = shalt.err (!%p1998_p4)
}
 0x1c5   :  { %s2002_s27 = scalar_lea.hbm %s2675_s5, 32 }
 0x1c6   :  { %p2003_p5 = scmp.ne.s32.totalorder %s2675_s5, %s2002_s27  ;;  %p2006_p6 = scmp.lt.u32.totalorder %s2002_s27, %s2675_s5 }
 0x1c8   :  { %p2008_p7 = pnand %p2006_p6, %p2003_p5 }
 0x1ca   :  { %2011 = shalt.err (!%p2008_p7)
}
 0x1cb   :  { %1739 = dma.vmem_to_hbm [thread:$0]  %s1737_s24, 32, %s2675_s5, [#allocation4]  }
 0x1cc   :  { %2012 = dma.done.wait [#allocation4], 32  }
 0x1cd   :  { %2013 = vsyncadd [#allocation4], 4294967264 }
 0x1ce   :  { %1743 = vsyncpa [#allocation4], 1 }

</bundles_post_ra>
